<compile_context>
chip_gen: v7x
topology: tpu7x:2x2x1
jax: 0.10.0
libtpu: 0.0.40
codegen_flags: <defaults>
</compile_context>

<pallas_src>
import jax
import jax.numpy as jnp
from jax.experimental import pallas as pl
from jax.experimental.pallas import tpu as pltpu


# ----------------------------------------------------------------------------
# Per-generation budgets (v5e/v6e: 128 MiB VMEM, v7x: 64 MiB)
# ----------------------------------------------------------------------------

def _detect_vmem_bytes():
    try:
        info = pltpu.get_tpu_info()
        cap = getattr(info, "vmem_capacity_bytes", None)
        if cap:
            return int(cap)
    except Exception:
        pass
    return 64 * 1024 * 1024  # conservative default = v7x physical VMEM


_VMEM_CAP = _detect_vmem_bytes()
_VMEM_LIMIT = int(_VMEM_CAP * 3 // 4)                      # scoped-VMEM limit per kernel
_SCRATCH_BUDGET = max(_VMEM_CAP // 16, 2 * 1024 * 1024)    # expanded-activation scratch
_ACC_BUDGET = 1 * 1024 * 1024                              # f32 depthwise accumulator


def _cparams(dim_sems):
    return pltpu.CompilerParams(dimension_semantics=dim_sems,
                                vmem_limit_bytes=_VMEM_LIMIT)


def _relu6(x):
    return jnp.minimum(jnp.maximum(x, 0.0), 6.0)


def _pad_to(n, m=128):
    return ((n + m - 1) // m) * m


def _div_tile(dim, cap, align):
    """Largest tile <= cap dividing dim and aligned to `align`, else the full dim."""
    if dim <= cap:
        return dim
    for t in range(cap, 0, -1):
        if dim % t == 0 and t % align == 0:
            return t
    return dim


def _row_tile_for(h, w, hidden, planes=1):
    """Largest divisor of h whose f32 depthwise accumulator / bf16 expanded scratch
    stay inside the per-generation byte budgets (whole image when it fits)."""
    best = 1
    for t in range(1, h + 1):
        if h % t:
            continue
        acc_bytes = t * w * hidden * 4
        scratch_bytes = planes * (t + 2) * (w + 2) * hidden * 2
        if acc_bytes <= _ACC_BUDGET and scratch_bytes <= _SCRATCH_BUDGET:
            best = t
    return best


def _parity_planes(x):
    """(N, H, W, C) -> (N*4, H//2, W//2, C); plane index = 2*row_parity + col_parity."""
    n, h, w, c = x.shape
    planes = jnp.stack(
        [x[:, 0::2, 0::2, :], x[:, 0::2, 1::2, :],
         x[:, 1::2, 0::2, :], x[:, 1::2, 1::2, :]], axis=1)
    return planes.reshape(n * 4, h // 2, w // 2, c)


# ----------------------------------------------------------------------------
# Tiled matmul + bias + ReLU6 (stem im2col conv and the standalone 1x1 conv)
# ----------------------------------------------------------------------------

def _matmul_bias_relu6(x2, w, b, act=True):
    M, K = x2.shape
    N = w.shape[-1]
    tm = _div_tile(M, 2048, 8)       # raised M cap (amortizes per-step overhead)
    tn = _div_tile(N, 256, 128)      # lane-dense output tiles

    def kernel(x_ref, w_ref, b_ref, o_ref):
        y = jnp.dot(x_ref[...], w_ref[...], preferred_element_type=jnp.float32)
        y = y + b_ref[...]
        if act:
            y = _relu6(y)
        o_ref[...] = y.astype(o_ref.dtype)

    return pl.pallas_call(
        kernel,
        out_shape=jax.ShapeDtypeStruct((M, N), jnp.bfloat16),
        # weight block index depends only on the OUTER axis -> weights stay
        # VMEM-resident across all inner M tiles.
        grid=(N // tn, M // tm),
        in_specs=[pl.BlockSpec((tm, K), lambda j, i: (i, 0)),
                  pl.BlockSpec((K, tn), lambda j, i: (0, j)),
                  pl.BlockSpec((1, tn), lambda j, i: (0, j))],
        out_specs=pl.BlockSpec((tm, tn), lambda j, i: (i, j)),
        compiler_params=_cparams(("parallel", "parallel")),
    )(x2, w, b.reshape(1, N).astype(jnp.float32))


# ----------------------------------------------------------------------------
# Stem: 3x3 stride-2 conv + BN bias + ReLU6 as ONE K=27 matmul (lane-dense im2col)
# ----------------------------------------------------------------------------

def _stem_conv(x_nhwc, layer):
    Nb, H, W, _ = x_nhwc.shape
    assert H % 2 == 0 and W % 2 == 0
    Hh, Wh = H // 2, W // 2
    w27, b = layer["w27"], layer["b"]
    Cout = w27.shape[-1]
    # im2col in the wrapper (tiny tensor; avoids a channels=3 last-dim scratch that
    # would pad 3 -> 128 lanes inside the kernel).
    xpad = jnp.pad(x_nhwc, ((0, 0), (1, 1), (1, 1), (0, 0)))
    taps = [xpad[:, ki:ki + H:2, kj:kj + W:2, :]
            for ki in range(3) for kj in range(3)]
    patches = jnp.concatenate(taps, axis=-1)                 # (Nb, Hh, Wh, 27)
    out = _matmul_bias_relu6(patches.reshape(Nb * Hh * Wh, 27), w27, b)
    return out.reshape(Nb, Hh, Wh, Cout)


# ----------------------------------------------------------------------------
# Fused inverted residual, stride 2 (parity planes, row-tiled, no residual)
# ----------------------------------------------------------------------------

def _fused_ir_s2(x_nhwc, blk):
    Nb, H, W, Cin = x_nhwc.shape
    assert H % 2 == 0 and W % 2 == 0, "stride-2 block needs even spatial dims"
    assert "expand_w" in blk
    Hh, Wh = H // 2, W // 2
    hidden = blk["dw_w"].shape[-1]
    Cout = blk["proj_w"].shape[-1]
    xp = _parity_planes(x_nhwc)                               # (Nb*4, Hh, Wh, Cin)
    tho = _row_tile_for(Hh, Wh, hidden, planes=4)
    n_rt = Hh // tho

    def kernel(xm_ref, xh_ref, we_ref, be_ref, wd_ref, bd_ref, wp_ref, bp_ref,
               o_ref, p_ref):
        r = pl.program_id(1)

        # Scratch persists across steps: re-zero only the left padding column.
        p_ref[:, :, 0:1, :] = jnp.zeros((4, tho + 1, 1, hidden), p_ref.dtype)

        # Expand each parity plane separately (bounds the f32 intermediate to one
        # plane) and write the ReLU6'd bf16 result straight into the scratch.
        for p in range(4):
            e = jnp.dot(xm_ref[p].reshape(tho * Wh, Cin), we_ref[...],
                        preferred_element_type=jnp.float32)
            e = _relu6(e + be_ref[...])
            p_ref[p, 1:tho + 1, 1:Wh + 1, :] = (
                e.astype(p_ref.dtype).reshape(tho, Wh, hidden))

        # Top halo: odd-row parity planes (2,3) at plane row i0-1; at the image top
        # the conv zero-padding applies in the *expanded* domain -> zero it.
        eh = jnp.dot(xh_ref[...].reshape(2 * Wh, Cin), we_ref[...],
                     preferred_element_type=jnp.float32)
        eh = _relu6(eh + be_ref[...])
        eh = jnp.where(r > 0, eh, 0.0)
        p_ref[2:4, 0:1, 1:Wh + 1, :] = (
            eh.astype(p_ref.dtype).reshape(2, 1, Wh, hidden))

        # Depthwise 3x3 / stride 2 computed directly at output resolution.
        acc = jnp.zeros((tho, Wh, hidden), jnp.float32)
        for ki in range(3):
            rp = 1 - (ki & 1)
            r0 = 0 if ki == 0 else 1
            for kj in range(3):
                cp = 1 - (kj & 1)
                c0 = 0 if kj == 0 else 1
                tap = p_ref[2 * rp + cp, r0:r0 + tho, c0:c0 + Wh, :]
                acc = acc + tap.astype(jnp.float32) * wd_ref[ki, kj, :]
        d = _relu6(acc + bd_ref[...])

        # Linear projection (stride-2 blocks never carry a residual).
        y = jnp.dot(d.reshape(tho * Wh, hidden).astype(jnp.bfloat16), wp_ref[...],
                    preferred_element_type=jnp.float32) + bp_ref[...]
        o_ref[0] = y.reshape(tho, Wh, Cout).astype(o_ref.dtype)

    return pl.pallas_call(
        kernel,
        out_shape=jax.ShapeDtypeStruct((Nb, Hh, Wh, Cout), jnp.bfloat16),
        grid=(Nb, n_rt),
        in_specs=[
            pl.BlockSpec((4, tho, Wh, Cin), lambda n, r: (n, r, 0, 0)),
            # halo = the two odd-row parity planes at plane row i0-1 (clamped).
            pl.BlockSpec((2, 1, Wh, Cin),
                         lambda n, r: (2 * n + 1, jnp.maximum(r * tho - 1, 0), 0, 0)),
            pl.BlockSpec((Cin, hidden), lambda n, r: (0, 0)),
            pl.BlockSpec((1, hidden), lambda n, r: (0, 0)),
            pl.BlockSpec((3, 3, hidden), lambda n, r: (0, 0, 0)),
            pl.BlockSpec((1, hidden), lambda n, r: (0, 0)),
            pl.BlockSpec((hidden, Cout), lambda n, r: (0, 0)),
            pl.BlockSpec((1, Cout), lambda n, r: (0, 0)),
        ],
        out_specs=pl.BlockSpec((1, tho, Wh, Cout), lambda n, r: (n, r, 0, 0)),
        scratch_shapes=[pltpu.VMEM((4, tho + 1, Wh + 1, hidden), jnp.bfloat16)],
        compiler_params=_cparams(("parallel", "parallel")),
    )(xp, xp, blk["expand_w"], blk["expand_b"].reshape(1, hidden),
      blk["dw_w"], blk["dw_b"].reshape(1, hidden),
      blk["proj_w"], blk["proj_b"].reshape(1, Cout))


# ----------------------------------------------------------------------------
# Fused inverted residual, stride 1 (row-tiled, fused halo matmul, optional residual)
# ----------------------------------------------------------------------------

def _fused_ir_s1(x_nhwc, blk):
    Nb, H, W, Cin = x_nhwc.shape
    hidden = blk["dw_w"].shape[-1]
    Cout = blk["proj_w"].shape[-1]
    has_expand = "expand_w" in blk
    use_res = blk["use_res"]
    tho = _row_tile_for(H, W, hidden)
    n_rt = H // tho
    nr = tho + 2

    def kernel(*refs):
        if has_expand:
            (xm_ref, xt_ref, xb_ref, we_ref, be_ref, wd_ref, bd_ref,
             wp_ref, bp_ref, o_ref, rows_ref, ep_ref) = refs
        else:
            (xm_ref, xt_ref, xb_ref, wd_ref, bd_ref,
             wp_ref, bp_ref, o_ref, rows_ref, ep_ref) = refs
        r = pl.program_id(1)

        # Stage tho+2 contiguous input rows (halos come from clamped BlockSpecs),
        # then expand them all in ONE MXU matmul (no tiny M=W halo matmuls).
        rows_ref[0:1, :, :] = xt_ref[0]
        rows_ref[1:tho + 1, :, :] = xm_ref[0]
        rows_ref[tho + 1:nr, :, :] = xb_ref[0]
        rows = rows_ref[...]
        if has_expand:
            e = jnp.dot(rows.reshape(nr * W, Cin), we_ref[...],
                        preferred_element_type=jnp.float32)
            e = _relu6(e + be_ref[...]).astype(ep_ref.dtype).reshape(nr, W, hidden)
        else:
            e = rows                                     # t == 1: no expand conv

        # Scratch persists across steps: re-zero only the 1-wide borders the 3x3
        # taps actually read (left/right cols every step; top/bottom rows only at
        # image boundaries, where the conv zero-padding applies to the expanded map).
        zc = jnp.zeros((nr, 1, hidden), ep_ref.dtype)
        ep_ref[:, 0:1, :] = zc
        ep_ref[:, W + 1:W + 2, :] = zc
        ep_ref[:, 1:W + 1, :] = e

        @pl.when(r == 0)
        def _():
            ep_ref[0:1, 1:W + 1, :] = jnp.zeros((1, W, hidden), ep_ref.dtype)

        @pl.when(r == n_rt - 1)
        def _():
            ep_ref[tho + 1:nr, 1:W + 1, :] = jnp.zeros((1, W, hidden), ep_ref.dtype)

        # Depthwise 3x3 stride 1 (f32 accumulation, 128-dense lanes).
        acc = jnp.zeros((tho, W, hidden), jnp.float32)
        for ki in range(3):
            for kj in range(3):
                tap = ep_ref[ki:ki + tho, kj:kj + W, :]
                acc = acc + tap.astype(jnp.float32) * wd_ref[ki, kj, :]
        d = _relu6(acc + bd_ref[...])

        # Linear projection (+ bias, + residual), no activation.
        y = jnp.dot(d.reshape(tho * W, hidden).astype(jnp.bfloat16), wp_ref[...],
                    preferred_element_type=jnp.float32) + bp_ref[...]
        if use_res:
            y = y + xm_ref[0].astype(jnp.float32).reshape(tho * W, Cout)
        o_ref[0] = y.reshape(tho, W, Cout).astype(o_ref.dtype)

    in_specs = [
        pl.BlockSpec((1, tho, W, Cin), lambda n, r: (n, r, 0, 0)),
        pl.BlockSpec((1, 1, W, Cin),
                     lambda n, r: (n, jnp.maximum(r * tho - 1, 0), 0, 0)),
        pl.BlockSpec((1, 1, W, Cin),
                     lambda n, r: (n, jnp.minimum((r + 1) * tho, H - 1), 0, 0)),
    ]
    args = [x_nhwc, x_nhwc, x_nhwc]
    if has_expand:
        in_specs += [pl.BlockSpec((Cin, hidden), lambda n, r: (0, 0)),
                     pl.BlockSpec((1, hidden), lambda n, r: (0, 0))]
        args += [blk["expand_w"], blk["expand_b"].reshape(1, hidden)]
    in_specs += [pl.BlockSpec((3, 3, hidden), lambda n, r: (0, 0, 0)),
                 pl.BlockSpec((1, hidden), lambda n, r: (0, 0)),
                 pl.BlockSpec((hidden, Cout), lambda n, r: (0, 0)),
                 pl.BlockSpec((1, Cout), lambda n, r: (0, 0))]
    args += [blk["dw_w"], blk["dw_b"].reshape(1, hidden),
             blk["proj_w"], blk["proj_b"].reshape(1, Cout)]

    return pl.pallas_call(
        kernel,
        out_shape=jax.ShapeDtypeStruct((Nb, H, W, Cout), jnp.bfloat16),
        grid=(Nb, n_rt),
        in_specs=in_specs,
        out_specs=pl.BlockSpec((1, tho, W, Cout), lambda n, r: (n, r, 0, 0)),
        scratch_shapes=[pltpu.VMEM((nr, W, Cin), jnp.bfloat16),
                        pltpu.VMEM((nr, W + 2, hidden), jnp.bfloat16)],
        compiler_params=_cparams(("parallel", "parallel")),
    )(*args)


# ----------------------------------------------------------------------------
# Parameter construction (deterministic, MobileNetV2 width-1.0, 128-lane padded)
# ----------------------------------------------------------------------------

_MBV2_SETTINGS = [
    # t (expand), c (out channels), n (repeats), s (stride of first repeat)
    (1, 16, 1, 1),
    (6, 24, 2, 2),
    (6, 32, 3, 2),
    (6, 64, 4, 2),
    (6, 96, 3, 1),
    (6, 160, 3, 2),
    (6, 320, 1, 1),
]


def make_mobilenet_v2_params(key):
    keys = iter(jax.random.split(key, 128))

    def nk():
        return next(keys)

    def pad2(a, rows, cols):
        return jnp.pad(a, ((0, rows - a.shape[0]), (0, cols - a.shape[1])))

    layers = []
    # features[0]: Conv 3x3 s2, 3 -> 32 (+ folded BN bias, ReLU6); stored as K=27 matmul.
    w0 = jax.random.normal(nk(), (3, 3, 3, 32), jnp.float32) * 0.1
    layers.append(dict(
        kind="stem",
        w27=pad2(w0.reshape(27, 32), 27, _pad_to(32)).astype(jnp.bfloat16),
        b=jnp.zeros((_pad_to(32),), jnp.float32),
        true_c=32,
    ))
    cin_true, cin = 32, _pad_to(32)
    for t, c, n, s in _MBV2_SETTINGS:
        c_pad = _pad_to(c)
        for i in range(n):
            stride = s if i == 0 else 1
            hidden_true = cin_true * t
            hidden = _pad_to(hidden_true)
            blk = dict(kind="ir", stride=stride,
                       use_res=(stride == 1 and cin_true == c), true_c=c)
            if t != 1:
                we = (jax.random.normal(nk(), (cin_true, hidden_true), jnp.float32)
                      * (cin_true ** -0.5))
                blk["expand_w"] = pad2(we, cin, hidden).astype(jnp.bfloat16)
                blk["expand_b"] = jnp.zeros((hidden,), jnp.float32)
            wd = jax.random.normal(nk(), (3, 3, hidden_true), jnp.float32) * 0.2
            blk["dw_w"] = jnp.pad(wd, ((0, 0), (0, 0), (0, hidden - hidden_true)))
            blk["dw_b"] = jnp.zeros((hidden,), jnp.float32)
            wp = (jax.random.normal(nk(), (hidden_true, c), jnp.float32)
                  * (hidden_true ** -0.5))
            blk["proj_w"] = pad2(wp, hidden, c_pad).astype(jnp.bfloat16)
            blk["proj_b"] = jnp.zeros((c_pad,), jnp.float32)
            layers.append(blk)
            cin_true, cin = c, c_pad
    # features[18]: Conv 1x1, 320 -> 1280 (+ folded BN bias, ReLU6)
    wl = (jax.random.normal(nk(), (cin_true, 1280), jnp.float32)
          * (cin_true ** -0.5))
    layers.append(dict(kind="pw",
                       w=pad2(wl, cin, 1280).astype(jnp.bfloat16),
                       b=jnp.zeros((1280,), jnp.float32),
                       true_c=1280))
    return layers


# ----------------------------------------------------------------------------
# Encoder forward (mirrors torch Encoder.forward: returns every intermediate)
# ----------------------------------------------------------------------------

def encoder_forward(x_nchw, layers, out_layout="nhwc"):
    """Returns [x, feat_0, ..., feat_18] like the torch module.

    Activations travel between blocks with channels padded to multiples of 128
    (lane-dense); each returned feature is sliced back to its true channel count.
    out_layout="nhwc" (default) defers the NHWC->NCHW transposes; pass "nchw" to
    reproduce the torch layout."""
    x_nhwc = jnp.transpose(x_nchw, (0, 2, 3, 1))
    h = x_nhwc.astype(jnp.bfloat16)
    feats = [x_nhwc if out_layout == "nhwc" else x_nchw]
    for layer in layers:
        if layer["kind"] == "stem":
            h = _stem_conv(h, layer)
        elif layer["kind"] == "pw":
            Nb, H, W, Cin = h.shape
            h = _matmul_bias_relu6(h.reshape(Nb * H * W, Cin),
                                   layer["w"], layer["b"]).reshape(
                                       Nb, H, W, layer["w"].shape[-1])
        elif layer["stride"] == 2:
            h = _fused_ir_s2(h, layer)
        else:
            h = _fused_ir_s1(h, layer)
        f = h[..., :layer["true_c"]]          # strip lane padding for the output list
        feats.append(f if out_layout == "nhwc" else jnp.transpose(f, (0, 3, 1, 2)))
    return feats


if __name__ == "__main__":
    key = jax.random.PRNGKey(0)
    pkey, xkey = jax.random.split(key)
    layers = make_mobilenet_v2_params(pkey)

    # Small, MobileNetV2-consistent input: batch=2, 3 channels, 32x32 spatial (NCHW).
    x = jax.random.normal(xkey, (2, 3, 32, 32), jnp.float32)

    feats = encoder_forward(x, layers)             # NHWC features (deferred transposes)
    feats = jax.block_until_ready(feats)

    # sanity: input + 19 feature modules; final feature is 1280-channel at 1x1
    assert len(feats) == 20
    assert feats[0].shape == (2, 32, 32, 3)
    assert feats[1].shape == (2, 16, 16, 32)
    assert feats[2].shape == (2, 16, 16, 16)
    assert feats[-1].shape == (2, 1, 1, 1280)

    print("KERNEL_OK")
</pallas_src>

<mosaic_0001>
module attributes {stable_mosaic.version = 11 : i64} {
  func.func @kernel(%arg0: i32, %arg1: i32, %arg2: memref<512x27xbf16, #tpu.memory_space<vmem>>, %arg3: memref<27x128xbf16, #tpu.memory_space<vmem>>, %arg4: memref<1x128xf32, #tpu.memory_space<vmem>>, %arg5: memref<512x128xbf16, #tpu.memory_space<vmem>>) attributes {dimension_semantics = [#tpu.dimension_semantics<parallel>, #tpu.dimension_semantics<parallel>], iteration_bounds = array<i64: 1, 1>, scalar_prefetch = 0 : i64, scratch_operands = 0 : i64, tpu.core_type = #tpu.core_type<tc>, window_params = [{transform_indices = @transform_0, window_bounds = array<i64: 512, 27>}, {transform_indices = @transform_1, window_bounds = array<i64: 27, 128>}, {transform_indices = @transform_2, window_bounds = array<i64: 1, 128>}, {transform_indices = @transform_3, window_bounds = array<i64: 512, 128>}]} {
    %c0 = arith.constant 0 : index
    %c0_0 = arith.constant 0 : index
    %0 = vector.load %arg2[%c0, %c0_0] : memref<512x27xbf16, #tpu.memory_space<vmem>>, vector<512x27xbf16>
    %c0_1 = arith.constant 0 : index
    %c0_2 = arith.constant 0 : index
    %1 = vector.load %arg3[%c0_1, %c0_2] : memref<27x128xbf16, #tpu.memory_space<vmem>>, vector<27x128xbf16>
    %cst = arith.constant dense<0.000000e+00> : vector<512x128xf32>
    %2 = tpu.matmul %0, %1, %cst {dimension_numbers = #tpu.dot_dimension_numbers<[1], [0], [0], [1], [0, 0, 1, 1], [], []>} : vector<512x27xbf16>, vector<27x128xbf16>, vector<512x128xf32> -> vector<512x128xf32>
    %c0_3 = arith.constant 0 : index
    %c0_4 = arith.constant 0 : index
    %3 = vector.load %arg4[%c0_3, %c0_4] : memref<1x128xf32, #tpu.memory_space<vmem>>, vector<1x128xf32>
    %4 = vector.broadcast %3 : vector<1x128xf32> to vector<512x128xf32>
    %5 = arith.addf %2, %4 : vector<512x128xf32>
    %cst_5 = arith.constant 0.000000e+00 : f32
    %6 = vector.broadcast %cst_5 : f32 to vector<512x128xf32>
    %7 = arith.maximumf %5, %6 : vector<512x128xf32>
    %cst_6 = arith.constant 6.000000e+00 : f32
    %8 = vector.broadcast %cst_6 : f32 to vector<512x128xf32>
    %9 = arith.minimumf %7, %8 : vector<512x128xf32>
    %10 = arith.truncf %9 : vector<512x128xf32> to vector<512x128xbf16>
    %c0_7 = arith.constant 0 : index
    %c0_8 = arith.constant 0 : index
    %11 = vector.load %arg5[%c0_7, %c0_8] : memref<512x128xbf16, #tpu.memory_space<vmem>>, vector<512x128xbf16>
    tpu.vector_store %arg5[%c0_7, %c0_8], %10 {strides = array<i32>} : memref<512x128xbf16, #tpu.memory_space<vmem>>, vector<512x128xbf16>,
    return
  }
  func.func @transform_0(%arg0: i32, %arg1: i32) -> (i32, i32) {
    %c0_i32 = arith.constant 0 : i32
    %c0_i32_0 = arith.constant 0 : i32
    return %arg1, %c0_i32 : i32, i32
  }
  func.func @transform_1(%arg0: i32, %arg1: i32) -> (i32, i32) {
    %c0_i32 = arith.constant 0 : i32
    %c0_i32_0 = arith.constant 0 : i32
    return %c0_i32, %arg0 : i32, i32
  }
  func.func @transform_2(%arg0: i32, %arg1: i32) -> (i32, i32) {
    %c0_i32 = arith.constant 0 : i32
    %c0_i32_0 = arith.constant 0 : i32
    return %c0_i32, %arg0 : i32, i32
  }
  func.func @transform_3(%arg0: i32, %arg1: i32) -> (i32, i32) {
    %c0_i32 = arith.constant 0 : i32
    return %arg1, %arg0 : i32, i32
  }
}

</mosaic_0001>

<bundles_post_ra>
// kernel: tpu_custom_call.1
= control target key start
LH: loop header
LB: loop body
LE: loop exit
PB: predicated region body
PF: predicated region fallthrough
CT: control target
= control target key end

     0   :  { %vm359_vm0 = vcmask 1044480   ;;  %vm360_vm1 = vcmask 1045504   ;;  %v1673_v2 = vmov 65535   ;;  %vm262_vm2 = vcmask 220160   ;;  %s1912_s0 = inlined_call_operand.vmem [shape: bf16[512,27], index: 0, kind: input, shape index: {}]   ;;  %s1913_s1 = inlined_call_operand.vmem [shape: bf16[27,128], index: 1, kind: input, shape index: {}]   ;;  %s1914_s2 = inlined_call_operand.vmem [shape: f32[1,128], index: 2, kind: input, shape index: {}]   ;;  %s1915_s3 = inlined_call_operand.hbm [shape: bf16[512,128], index: 3, kind: output, shape index: {}]  }
   0x1   :  { %v1615_v0 = vld [vmem:[%s1913_s1] sm:$0xff]   ;;  %v1616_v1 = vld [vmem:[%s1913_s1 + $0x8] sm:$0x3f]   ;;  %v361_v3 = vsel %vm359_vm0, 4294967295, %v1673_v2  ;;  %v1621_v10 = vld [vmem:[%s1912_s0 + $0x10] sm:$0xff]  }
   0x2   :  { %1539 = vmatprep.subr.bf16.mxu0 %v1615_v0  ;;  %1607 = vmatprep.subr.bf16.mxu1 %v1615_v0  ;;  %v1617_v4 = vld [vmem:[%s1912_s0] sm:$0xff]   ;;  %v362_v6 = vsel %vm360_vm1, %v361_v3, 0  ;;  %v1619_v8 = vld [vmem:[%s1912_s0 + $0x8] sm:$0xff]   ;;  %v1622_v11 = vld [vmem:[%s1912_s0 + $0x90] sm:$0xff]  }
   0x3   :  { %1540 = vmatpush3.bf16.msra.mxu0 %v1615_v0  ;;  %1609 = vmatpush3.bf16.msra.mxu1 %v1615_v0  ;;  %v1618_v5 = vld [vmem:[%s1912_s0 + $0x80] sm:$0xff]   ;;  %v364_v7 = vand.u32 %v1616_v1, %v362_v6  ;;  %v1620_v9 = vld [vmem:[%s1912_s0 + $0x88] sm:$0xff]   ;;  %v1623_v12 = vld [vmem:[%s1912_s0 + $0x18] sm:$0xff]  }
   0x4   :  { %1543 = vmatprep.mubr.msk.bf16.mxu0 %vm262_vm2, %v1617_v4  ;;  %1575 = vmatprep.mubr.msk.bf16.mxu1 %vm262_vm2, %v1618_v5  ;;  %v1624_v13 = vld [vmem:[%s1912_s0 + $0x98] sm:$0xff]   ;;  %v1625_v14 = vld [vmem:[%s1912_s0 + $0x20] sm:$0xff]   ;;  %v1627_v16 = vld [vmem:[%s1912_s0 + $0x28] sm:$0xff]  }
   0x5   :  { %1541 = vmatprep.subr.bf16.mxu0 %v364_v7  ;;  %1608 = vmatprep.subr.bf16.mxu1 %v364_v7  ;;  %v1626_v15 = vld [vmem:[%s1912_s0 + $0xa0] sm:$0xff]   ;;  %v1628_v17 = vld [vmem:[%s1912_s0 + $0xa8] sm:$0xff]   ;;  %v1629_v18 = vld [vmem:[%s1912_s0 + $0x30] sm:$0xff]  }
   0x6   :  { %v1630_v19 = vld [vmem:[%s1912_s0 + $0xb0] sm:$0xff]   ;;  %v1631_v20 = vld [vmem:[%s1912_s0 + $0x38] sm:$0xff]   ;;  %v1633_v22 = vld [vmem:[%s1912_s0 + $0x40] sm:$0xff]  }
   0x7   :  { %1542 = vmatpush3.bf16.msra.mxu0 %v364_v7  ;;  %1610 = vmatpush3.bf16.msra.mxu1 %v364_v7  ;;  %v1632_v21 = vld [vmem:[%s1912_s0 + $0xb8] sm:$0xff]   ;;  %v1634_v23 = vld [vmem:[%s1912_s0 + $0xc0] sm:$0xff]  }
   0xa   :  { %1544 = vmatmul.mubr.msk.bf16.vlgmr.msra.gmra.mrb[0].mxu0 %vm262_vm2, %v1619_v8  ;;  %1576 = vmatmul.mubr.msk.bf16.vlgmr.msra.gmra.mrb[0].mxu1 %vm262_vm2, %v1620_v9 }
   0xb   :  { %1547 = vmatprep.mubr.msk.bf16.mxu0 %vm262_vm2, %v1621_v10  ;;  %1579 = vmatprep.mubr.msk.bf16.mxu1 %vm262_vm2, %v1622_v11 }
  0x12   :  { %1548 = vmatmul.mubr.msk.bf16.gmra.mrb[4].mxu0 %vm262_vm2, %v1623_v12  ;;  %1580 = vmatmul.mubr.msk.bf16.gmra.mrb[4].mxu1 %vm262_vm2, %v1624_v13 }
  0x13   :  { %1551 = vmatprep.mubr.msk.bf16.mxu0 %vm262_vm2, %v1625_v14  ;;  %1583 = vmatprep.mubr.msk.bf16.mxu1 %vm262_vm2, %v1626_v15 }
  0x1a   :  { %1552 = vmatmul.mubr.msk.bf16.gmra.mrb[8].mxu0 %vm262_vm2, %v1627_v16  ;;  %1584 = vmatmul.mubr.msk.bf16.gmra.mrb[8].mxu1 %vm262_vm2, %v1628_v17 }
  0x1b   :  { %1555 = vmatprep.mubr.msk.bf16.mxu0 %vm262_vm2, %v1629_v18  ;;  %1587 = vmatprep.mubr.msk.bf16.mxu1 %vm262_vm2, %v1630_v19 }
  0x1c   :  { %8 = vsyncpa [#allocation3], 0  ;;  %v1635_v24 = vld [vmem:[%s1912_s0 + $0x48] sm:$0xff]   ;;  %v1637_v26 = vld [vmem:[%s1912_s0 + $0x50] sm:$0xff]  }
  0x1d   :  { %v1636_v25 = vld [vmem:[%s1912_s0 + $0xc8] sm:$0xff]   ;;  %v1638_v27 = vld [vmem:[%s1912_s0 + $0xd0] sm:$0xff]   ;;  %v1639_v28 = vld [vmem:[%s1912_s0 + $0x58] sm:$0xff]  }
  0x1e   :  { %v1640_v29 = vld [vmem:[%s1912_s0 + $0xd8] sm:$0xff]   ;;  %v1641_v30 = vld [vmem:[%s1912_s0 + $0x60] sm:$0xff]   ;;  %v1643_v32 = vld [vmem:[%s1912_s0 + $0x68] sm:$0xff]  }
  0x1f   :  { %v1642_v31 = vld [vmem:[%s1912_s0 + $0xe0] sm:$0xff]   ;;  %v1644_v33 = vld [vmem:[%s1912_s0 + $0xe8] sm:$0xff]   ;;  %v1645_v34 = vld [vmem:[%s1912_s0 + $0x70] sm:$0xff]  }
  0x20   :  { %v1646_v35 = vld [vmem:[%s1912_s0 + $0xf0] sm:$0xff]   ;;  %v1647_v36 = vld [vmem:[%s1912_s0 + $0x78] sm:$0xff]   ;;  %v1834_v38 = vld [vmem:[%s1914_s2] ss:$0 sm:$0xff] }
  0x21   :  { %v1648_v37 = vld [vmem:[%s1912_s0 + $0xf8] sm:$0xff]   ;;  %s1674_s0 = smov [#allocation2]  }
  0x22   :  { %1556 = vmatmul.mubr.msk.bf16.gmra.mrb[12].mxu0 %vm262_vm2, %v1631_v20  ;;  %1588 = vmatmul.mubr.msk.bf16.gmra.mrb[12].mxu1 %vm262_vm2, %v1632_v21  ;;  %s1108_s2 = sshll.u32 %s1674_s0, 4  ;;  %s1109_s2 = int_to_ptr.vmem [resolvable:$true] %s1108_s2 }
  0x23   :  { %1559 = vmatprep.mubr.msk.bf16.mxu0 %vm262_vm2, %v1633_v22  ;;  %1591 = vmatprep.mubr.msk.bf16.mxu1 %vm262_vm2, %v1634_v23  ;;  %s1649_s25 = scalar_lea.vmem %s1109_s2, 4096  ;;  %p1654_p1 = scmp.lt.s32.totalorder %s1109_s2, %s1109_s2 }
  0x24   :  { %p1650_p0 = scmp.ne.s32.totalorder %s1109_s2, %s1649_s25  ;;  %p1655_p2 = scmp.lt.s32.totalorder %s1649_s25, %s1649_s25 }
  0x26   :  { %p1656_p3 = por %p1655_p2, %p1654_p1 }
  0x28   :  { %p1657_p4 = pnand %p1656_p3, %p1650_p0 }
  0x2a   :  { %1560 = vmatmul.mubr.msk.bf16.gmra.mrb[16].mxu0 %vm262_vm2, %v1635_v24  ;;  %1592 = vmatmul.mubr.msk.bf16.gmra.mrb[16].mxu1 %vm262_vm2, %v1636_v25 }
  0x2b   :  { %1563 = vmatprep.mubr.msk.bf16.mxu0 %vm262_vm2, %v1637_v26  ;;  %1595 = vmatprep.mubr.msk.bf16.mxu1 %vm262_vm2, %v1638_v27 }
  0x32   :  { %1564 = vmatmul.mubr.msk.bf16.gmra.mrb[20].mxu0 %vm262_vm2, %v1639_v28  ;;  %1596 = vmatmul.mubr.msk.bf16.gmra.mrb[20].mxu1 %vm262_vm2, %v1640_v29 }
  0x33   :  { %1567 = vmatprep.mubr.msk.bf16.mxu0 %vm262_vm2, %v1641_v30  ;;  %1599 = vmatprep.mubr.msk.bf16.mxu1 %vm262_vm2, %v1642_v31 }
  0x3a   :  { %1568 = vmatmul.mubr.msk.bf16.gmra.mrb[24].mxu0 %vm262_vm2, %v1643_v32  ;;  %1600 = vmatmul.mubr.msk.bf16.gmra.mrb[24].mxu1 %vm262_vm2, %v1644_v33 }
  0x3b   :  { %1571 = vmatprep.mubr.msk.bf16.mxu0 %vm262_vm2, %v1645_v34  ;;  %1603 = vmatprep.mubr.msk.bf16.mxu1 %vm262_vm2, %v1646_v35 }
  0x42   :  { %1572 = vmatmul.mubr.msk.bf16.gmra.mrb[28].mxu0 %vm262_vm2, %v1647_v36  ;;  %1604 = vmatmul.mubr.msk.bf16.gmra.mrb[28].mxu1 %vm262_vm2, %v1648_v37 }
  0xdd   :  { %v1545_v39 = vpop.f32.mrb[0].mxu0  ;;  %v1577_v40 = vpop.f32.mrb[0].mxu1 }
  0xde   :  { %v409_v41 = vadd.f32 %v1545_v39, %v1834_v38  ;;  %v537_v42 = vadd.f32 %v1577_v40, %v1834_v38  ;;  %v400_v43 = vpop.f32.mrb[1].mxu0  ;;  %v528_v44 = vpop.f32.mrb[1].mxu1 }
  0xdf   :  { %v401_v45 = vadd.f32 %v1834_v38, %v400_v43  ;;  %v529_v46 = vadd.f32 %v1834_v38, %v528_v44  ;;  %v1546_v47 = vpop.f32.mrb[2].mxu0  ;;  %v1578_v48 = vpop.f32.mrb[2].mxu1 }
  0xe0   :  { %v657_v49 = vmax.f32 %v409_v41, 0.0  ;;  %v689_v50 = vmax.f32 %v537_v42, 0.0  ;;  %v412_v51 = vadd.f32 %v1546_v47, %v1834_v38  ;;  %v540_v52 = vadd.f32 %v1578_v48, %v1834_v38  ;;  %v403_v53 = vpop.f32.mrb[3].mxu0  ;;  %v531_v54 = vpop.f32.mrb[3].mxu1 }
  0xe1   :  { %v655_v55 = vmax.f32 %v401_v45, 0.0  ;;  %v687_v56 = vmax.f32 %v529_v46, 0.0  ;;  %v404_v57 = vadd.f32 %v1834_v38, %v403_v53  ;;  %v532_v58 = vadd.f32 %v1834_v38, %v531_v54 }
  0xe2   :  { %v658_v59 = vmax.f32 %v412_v51, 0.0  ;;  %v690_v60 = vmax.f32 %v540_v52, 0.0  ;;  %v721_v63 = vmin.f32 %v657_v49, 6.0  ;;  %v753_v0 = vmin.f32 %v689_v50, 6.0 }
  0xe3   :  { %v656_v61 = vmax.f32 %v404_v57, 0.0  ;;  %v688_v62 = vmax.f32 %v532_v58, 0.0  ;;  %v719_v3 = vmin.f32 %v655_v55, 6.0  ;;  %v751_v4 = vmin.f32 %v687_v56, 6.0 }
  0xe4   :  { %v722_v1 = vmin.f32 %v658_v59, 6.0  ;;  %v754_v2 = vmin.f32 %v690_v60, 6.0 }
  0xe5   :  { %v720_v5 = vmin.f32 %v656_v61, 6.0  ;;  %v752_v6 = vmin.f32 %v688_v62, 6.0  ;;  %v1549_v7 = vpop.f32.mrb[4].mxu0  ;;  %v1581_v8 = vpop.f32.mrb[4].mxu1 }
  0xe6   :  { %v1322_v9 = vpack.c.bf16 %v722_v1, %v721_v63  ;;  %v1402_v10 = vpack.c.bf16 %v754_v2, %v753_v0  ;;  %v425_v11 = vadd.f32 %v1549_v7, %v1834_v38  ;;  %v553_v12 = vadd.f32 %v1581_v8, %v1834_v38  ;;  %v416_v13 = vpop.f32.mrb[5].mxu0  ;;  %v544_v14 = vpop.f32.mrb[5].mxu1 }
  0xe7   :  { %v1317_v15 = vpack.c.bf16 %v720_v5, %v719_v3  ;;  %v1397_v16 = vpack.c.bf16 %v752_v6, %v751_v4  ;;  %v417_v17 = vadd.f32 %v1834_v38, %v416_v13  ;;  %v545_v18 = vadd.f32 %v1834_v38, %v544_v14  ;;  %v1550_v19 = vpop.f32.mrb[6].mxu0  ;;  %v1582_v20 = vpop.f32.mrb[6].mxu1 }
  0xe8   :  { %1474 = vst [vmem:[#allocation2 + $0x8] sm:$0xff] %v1322_v9   ;;  %1490 = vst [vmem:[#allocation2 + $0x88] sm:$0xff] %v1402_v10   ;;  %v661_v21 = vmax.f32 %v425_v11, 0.0  ;;  %v693_v22 = vmax.f32 %v553_v12, 0.0  ;;  %v428_v23 = vadd.f32 %v1550_v19, %v1834_v38  ;;  %v556_v24 = vadd.f32 %v1582_v20, %v1834_v38  ;;  %v419_v25 = vpop.f32.mrb[7].mxu0  ;;  %v547_v26 = vpop.f32.mrb[7].mxu1 }
  0xe9   :  { %1318 = vst [vmem:[#allocation2] sm:$0xff] %v1317_v15   ;;  %1489 = vst [vmem:[#allocation2 + $0x80] sm:$0xff] %v1397_v16   ;;  %v659_v27 = vmax.f32 %v417_v17, 0.0  ;;  %v691_v28 = vmax.f32 %v545_v18, 0.0  ;;  %v420_v29 = vadd.f32 %v1834_v38, %v419_v25  ;;  %v548_v30 = vadd.f32 %v1834_v38, %v547_v26 }
  0xea   :  { %v662_v31 = vmax.f32 %v428_v23, 0.0  ;;  %v694_v32 = vmax.f32 %v556_v24, 0.0  ;;  %v725_v35 = vmin.f32 %v661_v21, 6.0  ;;  %v757_v36 = vmin.f32 %v693_v22, 6.0 }
  0xeb   :  { %v660_v33 = vmax.f32 %v420_v29, 0.0  ;;  %v692_v34 = vmax.f32 %v548_v30, 0.0  ;;  %v723_v40 = vmin.f32 %v659_v27, 6.0  ;;  %v755_v41 = vmin.f32 %v691_v28, 6.0 }
  0xec   :  { %v726_v37 = vmin.f32 %v662_v31, 6.0  ;;  %v758_v39 = vmin.f32 %v694_v32, 6.0 }
  0xed   :  { %v724_v42 = vmin.f32 %v660_v33, 6.0  ;;  %v756_v43 = vmin.f32 %v692_v34, 6.0  ;;  %v1553_v44 = vpop.f32.mrb[8].mxu0  ;;  %v1585_v45 = vpop.f32.mrb[8].mxu1 }
  0xee   :  { %v1332_v46 = vpack.c.bf16 %v726_v37, %v725_v35  ;;  %v1412_v47 = vpack.c.bf16 %v758_v39, %v757_v36  ;;  %v441_v48 = vadd.f32 %v1553_v44, %v1834_v38  ;;  %v569_v49 = vadd.f32 %v1585_v45, %v1834_v38  ;;  %v432_v50 = vpop.f32.mrb[9].mxu0  ;;  %v560_v51 = vpop.f32.mrb[9].mxu1 }
  0xef   :  { %v1327_v52 = vpack.c.bf16 %v724_v42, %v723_v40  ;;  %v1407_v53 = vpack.c.bf16 %v756_v43, %v755_v41  ;;  %v433_v54 = vadd.f32 %v1834_v38, %v432_v50  ;;  %v561_v55 = vadd.f32 %v1834_v38, %v560_v51  ;;  %v1554_v56 = vpop.f32.mrb[10].mxu0  ;;  %v1586_v57 = vpop.f32.mrb[10].mxu1 }
  0xf0   :  { %1476 = vst [vmem:[#allocation2 + $0x18] sm:$0xff] %v1332_v46   ;;  %1492 = vst [vmem:[#allocation2 + $0x98] sm:$0xff] %v1412_v47   ;;  %v665_v58 = vmax.f32 %v441_v48, 0.0  ;;  %v697_v59 = vmax.f32 %v569_v49, 0.0  ;;  %v444_v60 = vadd.f32 %v1554_v56, %v1834_v38  ;;  %v572_v61 = vadd.f32 %v1586_v57, %v1834_v38  ;;  %v435_v62 = vpop.f32.mrb[11].mxu0  ;;  %v563_v63 = vpop.f32.mrb[11].mxu1 }
  0xf1   :  { %1475 = vst [vmem:[#allocation2 + $0x10] sm:$0xff] %v1327_v52   ;;  %1491 = vst [vmem:[#allocation2 + $0x90] sm:$0xff] %v1407_v53   ;;  %v663_v0 = vmax.f32 %v433_v54, 0.0  ;;  %v695_v1 = vmax.f32 %v561_v55, 0.0  ;;  %v436_v2 = vadd.f32 %v1834_v38, %v435_v62  ;;  %v564_v3 = vadd.f32 %v1834_v38, %v563_v63 }
  0xf2   :  { %v666_v4 = vmax.f32 %v444_v60, 0.0  ;;  %v698_v5 = vmax.f32 %v572_v61, 0.0  ;;  %v729_v8 = vmin.f32 %v665_v58, 6.0  ;;  %v761_v9 = vmin.f32 %v697_v59, 6.0 }
  0xf3   :  { %v664_v6 = vmax.f32 %v436_v2, 0.0  ;;  %v696_v7 = vmax.f32 %v564_v3, 0.0  ;;  %v727_v12 = vmin.f32 %v663_v0, 6.0  ;;  %v759_v13 = vmin.f32 %v695_v1, 6.0 }
  0xf4   :  { %v730_v10 = vmin.f32 %v666_v4, 6.0  ;;  %v762_v11 = vmin.f32 %v698_v5, 6.0 }
  0xf5   :  { %v728_v14 = vmin.f32 %v664_v6, 6.0  ;;  %v760_v15 = vmin.f32 %v696_v7, 6.0  ;;  %v1557_v16 = vpop.f32.mrb[12].mxu0  ;;  %v1589_v17 = vpop.f32.mrb[12].mxu1 }
  0xf6   :  { %v1342_v18 = vpack.c.bf16 %v730_v10, %v729_v8  ;;  %v1422_v19 = vpack.c.bf16 %v762_v11, %v761_v9  ;;  %v457_v20 = vadd.f32 %v1557_v16, %v1834_v38  ;;  %v585_v21 = vadd.f32 %v1589_v17, %v1834_v38  ;;  %v448_v22 = vpop.f32.mrb[13].mxu0  ;;  %v576_v23 = vpop.f32.mrb[13].mxu1 }
  0xf7   :  { %v1337_v24 = vpack.c.bf16 %v728_v14, %v727_v12  ;;  %v1417_v25 = vpack.c.bf16 %v760_v15, %v759_v13  ;;  %v449_v26 = vadd.f32 %v1834_v38, %v448_v22  ;;  %v577_v27 = vadd.f32 %v1834_v38, %v576_v23  ;;  %v1558_v28 = vpop.f32.mrb[14].mxu0  ;;  %v1590_v29 = vpop.f32.mrb[14].mxu1 }
  0xf8   :  { %1478 = vst [vmem:[#allocation2 + $0x28] sm:$0xff] %v1342_v18   ;;  %1494 = vst [vmem:[#allocation2 + $0xa8] sm:$0xff] %v1422_v19   ;;  %v669_v30 = vmax.f32 %v457_v20, 0.0  ;;  %v701_v31 = vmax.f32 %v585_v21, 0.0  ;;  %v460_v32 = vadd.f32 %v1558_v28, %v1834_v38  ;;  %v588_v33 = vadd.f32 %v1590_v29, %v1834_v38  ;;  %v451_v34 = vpop.f32.mrb[15].mxu0  ;;  %v579_v35 = vpop.f32.mrb[15].mxu1 }
  0xf9   :  { %1477 = vst [vmem:[#allocation2 + $0x20] sm:$0xff] %v1337_v24   ;;  %1493 = vst [vmem:[#allocation2 + $0xa0] sm:$0xff] %v1417_v25   ;;  %v667_v36 = vmax.f32 %v449_v26, 0.0  ;;  %v699_v37 = vmax.f32 %v577_v27, 0.0  ;;  %v452_v39 = vadd.f32 %v1834_v38, %v451_v34  ;;  %v580_v40 = vadd.f32 %v1834_v38, %v579_v35 }
  0xfa   :  { %v670_v41 = vmax.f32 %v460_v32, 0.0  ;;  %v702_v42 = vmax.f32 %v588_v33, 0.0  ;;  %v733_v45 = vmin.f32 %v669_v30, 6.0  ;;  %v765_v46 = vmin.f32 %v701_v31, 6.0 }
  0xfb   :  { %v668_v43 = vmax.f32 %v452_v39, 0.0  ;;  %v700_v44 = vmax.f32 %v580_v40, 0.0  ;;  %v731_v49 = vmin.f32 %v667_v36, 6.0  ;;  %v763_v50 = vmin.f32 %v699_v37, 6.0 }
  0xfc   :  { %v734_v47 = vmin.f32 %v670_v41, 6.0  ;;  %v766_v48 = vmin.f32 %v702_v42, 6.0 }
  0xfd   :  { %v732_v51 = vmin.f32 %v668_v43, 6.0  ;;  %v764_v52 = vmin.f32 %v700_v44, 6.0  ;;  %v1561_v53 = vpop.f32.mrb[16].mxu0  ;;  %v1593_v54 = vpop.f32.mrb[16].mxu1 }
  0xfe   :  { %v1352_v55 = vpack.c.bf16 %v734_v47, %v733_v45  ;;  %v1432_v56 = vpack.c.bf16 %v766_v48, %v765_v46  ;;  %v473_v57 = vadd.f32 %v1561_v53, %v1834_v38  ;;  %v601_v58 = vadd.f32 %v1593_v54, %v1834_v38  ;;  %v464_v59 = vpop.f32.mrb[17].mxu0  ;;  %v592_v60 = vpop.f32.mrb[17].mxu1 }
  0xff   :  { %v1347_v61 = vpack.c.bf16 %v732_v51, %v731_v49  ;;  %v1427_v62 = vpack.c.bf16 %v764_v52, %v763_v50  ;;  %v465_v63 = vadd.f32 %v1834_v38, %v464_v59  ;;  %v593_v0 = vadd.f32 %v1834_v38, %v592_v60  ;;  %v1562_v1 = vpop.f32.mrb[18].mxu0  ;;  %v1594_v2 = vpop.f32.mrb[18].mxu1 }
 0x100   :  { %1480 = vst [vmem:[#allocation2 + $0x38] sm:$0xff] %v1352_v55   ;;  %1496 = vst [vmem:[#allocation2 + $0xb8] sm:$0xff] %v1432_v56   ;;  %v673_v3 = vmax.f32 %v473_v57, 0.0  ;;  %v705_v4 = vmax.f32 %v601_v58, 0.0  ;;  %v476_v5 = vadd.f32 %v1562_v1, %v1834_v38  ;;  %v604_v6 = vadd.f32 %v1594_v2, %v1834_v38  ;;  %v467_v7 = vpop.f32.mrb[19].mxu0  ;;  %v595_v8 = vpop.f32.mrb[19].mxu1 }
 0x101   :  { %1479 = vst [vmem:[#allocation2 + $0x30] sm:$0xff] %v1347_v61   ;;  %1495 = vst [vmem:[#allocation2 + $0xb0] sm:$0xff] %v1427_v62   ;;  %v671_v9 = vmax.f32 %v465_v63, 0.0  ;;  %v703_v10 = vmax.f32 %v593_v0, 0.0  ;;  %v468_v11 = vadd.f32 %v1834_v38, %v467_v7  ;;  %v596_v12 = vadd.f32 %v1834_v38, %v595_v8 }
 0x102   :  { %v674_v13 = vmax.f32 %v476_v5, 0.0  ;;  %v706_v14 = vmax.f32 %v604_v6, 0.0  ;;  %v737_v17 = vmin.f32 %v673_v3, 6.0  ;;  %v769_v18 = vmin.f32 %v705_v4, 6.0 }
 0x103   :  { %v672_v15 = vmax.f32 %v468_v11, 0.0  ;;  %v704_v16 = vmax.f32 %v596_v12, 0.0  ;;  %v735_v21 = vmin.f32 %v671_v9, 6.0  ;;  %v767_v22 = vmin.f32 %v703_v10, 6.0 }
 0x104   :  { %v738_v19 = vmin.f32 %v674_v13, 6.0  ;;  %v770_v20 = vmin.f32 %v706_v14, 6.0 }
 0x105   :  { %v736_v23 = vmin.f32 %v672_v15, 6.0  ;;  %v768_v24 = vmin.f32 %v704_v16, 6.0  ;;  %v1565_v25 = vpop.f32.mrb[20].mxu0  ;;  %v1597_v26 = vpop.f32.mrb[20].mxu1 }
 0x106   :  { %v1362_v27 = vpack.c.bf16 %v738_v19, %v737_v17  ;;  %v1442_v28 = vpack.c.bf16 %v770_v20, %v769_v18  ;;  %v489_v29 = vadd.f32 %v1565_v25, %v1834_v38  ;;  %v617_v30 = vadd.f32 %v1597_v26, %v1834_v38  ;;  %v480_v31 = vpop.f32.mrb[21].mxu0  ;;  %v608_v32 = vpop.f32.mrb[21].mxu1 }
 0x107   :  { %v1357_v33 = vpack.c.bf16 %v736_v23, %v735_v21  ;;  %v1437_v34 = vpack.c.bf16 %v768_v24, %v767_v22  ;;  %v481_v35 = vadd.f32 %v1834_v38, %v480_v31  ;;  %v609_v36 = vadd.f32 %v1834_v38, %v608_v32  ;;  %v1566_v37 = vpop.f32.mrb[22].mxu0  ;;  %v1598_v39 = vpop.f32.mrb[22].mxu1 }
 0x108   :  { %1482 = vst [vmem:[#allocation2 + $0x48] sm:$0xff] %v1362_v27   ;;  %1498 = vst [vmem:[#allocation2 + $0xc8] sm:$0xff] %v1442_v28   ;;  %v677_v40 = vmax.f32 %v489_v29, 0.0  ;;  %v709_v41 = vmax.f32 %v617_v30, 0.0  ;;  %v492_v42 = vadd.f32 %v1566_v37, %v1834_v38  ;;  %v620_v43 = vadd.f32 %v1598_v39, %v1834_v38  ;;  %v483_v44 = vpop.f32.mrb[23].mxu0  ;;  %v611_v45 = vpop.f32.mrb[23].mxu1 }
 0x109   :  { %1481 = vst [vmem:[#allocation2 + $0x40] sm:$0xff] %v1357_v33   ;;  %1497 = vst [vmem:[#allocation2 + $0xc0] sm:$0xff] %v1437_v34   ;;  %v675_v46 = vmax.f32 %v481_v35, 0.0  ;;  %v707_v47 = vmax.f32 %v609_v36, 0.0  ;;  %v484_v48 = vadd.f32 %v1834_v38, %v483_v44  ;;  %v612_v49 = vadd.f32 %v1834_v38, %v611_v45 }
 0x10a   :  { %v678_v50 = vmax.f32 %v492_v42, 0.0  ;;  %v710_v51 = vmax.f32 %v620_v43, 0.0  ;;  %v741_v54 = vmin.f32 %v677_v40, 6.0  ;;  %v773_v55 = vmin.f32 %v709_v41, 6.0 }
 0x10b   :  { %v676_v52 = vmax.f32 %v484_v48, 0.0  ;;  %v708_v53 = vmax.f32 %v612_v49, 0.0  ;;  %v739_v58 = vmin.f32 %v675_v46, 6.0  ;;  %v771_v59 = vmin.f32 %v707_v47, 6.0 }
 0x10c   :  { %v742_v56 = vmin.f32 %v678_v50, 6.0  ;;  %v774_v57 = vmin.f32 %v710_v51, 6.0 }
 0x10d   :  { %v740_v60 = vmin.f32 %v676_v52, 6.0  ;;  %v772_v61 = vmin.f32 %v708_v53, 6.0  ;;  %v1569_v62 = vpop.f32.mrb[24].mxu0  ;;  %v1601_v63 = vpop.f32.mrb[24].mxu1 }
 0x10e   :  { %v1372_v0 = vpack.c.bf16 %v742_v56, %v741_v54  ;;  %v1452_v1 = vpack.c.bf16 %v774_v57, %v773_v55  ;;  %v505_v2 = vadd.f32 %v1569_v62, %v1834_v38  ;;  %v633_v3 = vadd.f32 %v1601_v63, %v1834_v38  ;;  %v496_v4 = vpop.f32.mrb[25].mxu0  ;;  %v624_v5 = vpop.f32.mrb[25].mxu1 }
 0x10f   :  { %v1367_v6 = vpack.c.bf16 %v740_v60, %v739_v58  ;;  %v1447_v7 = vpack.c.bf16 %v772_v61, %v771_v59  ;;  %v497_v8 = vadd.f32 %v1834_v38, %v496_v4  ;;  %v625_v9 = vadd.f32 %v1834_v38, %v624_v5  ;;  %v1570_v10 = vpop.f32.mrb[26].mxu0  ;;  %v1602_v11 = vpop.f32.mrb[26].mxu1 }
 0x110   :  { %1484 = vst [vmem:[#allocation2 + $0x58] sm:$0xff] %v1372_v0   ;;  %1500 = vst [vmem:[#allocation2 + $0xd8] sm:$0xff] %v1452_v1   ;;  %v681_v12 = vmax.f32 %v505_v2, 0.0  ;;  %v713_v13 = vmax.f32 %v633_v3, 0.0  ;;  %v508_v14 = vadd.f32 %v1570_v10, %v1834_v38  ;;  %v636_v15 = vadd.f32 %v1602_v11, %v1834_v38  ;;  %v499_v16 = vpop.f32.mrb[27].mxu0  ;;  %v627_v17 = vpop.f32.mrb[27].mxu1 }
 0x111   :  { %1483 = vst [vmem:[#allocation2 + $0x50] sm:$0xff] %v1367_v6   ;;  %1499 = vst [vmem:[#allocation2 + $0xd0] sm:$0xff] %v1447_v7   ;;  %v679_v18 = vmax.f32 %v497_v8, 0.0  ;;  %v711_v19 = vmax.f32 %v625_v9, 0.0  ;;  %v500_v20 = vadd.f32 %v1834_v38, %v499_v16  ;;  %v628_v21 = vadd.f32 %v1834_v38, %v627_v17 }
 0x112   :  { %v682_v22 = vmax.f32 %v508_v14, 0.0  ;;  %v714_v23 = vmax.f32 %v636_v15, 0.0  ;;  %v745_v26 = vmin.f32 %v681_v12, 6.0  ;;  %v777_v27 = vmin.f32 %v713_v13, 6.0 }
 0x113   :  { %v680_v24 = vmax.f32 %v500_v20, 0.0  ;;  %v712_v25 = vmax.f32 %v628_v21, 0.0  ;;  %v743_v30 = vmin.f32 %v679_v18, 6.0  ;;  %v775_v31 = vmin.f32 %v711_v19, 6.0 }
 0x114   :  { %v746_v28 = vmin.f32 %v682_v22, 6.0  ;;  %v778_v29 = vmin.f32 %v714_v23, 6.0 }
 0x115   :  { %v744_v32 = vmin.f32 %v680_v24, 6.0  ;;  %v776_v33 = vmin.f32 %v712_v25, 6.0  ;;  %v1573_v34 = vpop.f32.mrb[28].mxu0  ;;  %v1605_v35 = vpop.f32.mrb[28].mxu1 }
 0x116   :  { %v1382_v36 = vpack.c.bf16 %v746_v28, %v745_v26  ;;  %v1462_v37 = vpack.c.bf16 %v778_v29, %v777_v27  ;;  %v521_v39 = vadd.f32 %v1573_v34, %v1834_v38  ;;  %v649_v40 = vadd.f32 %v1605_v35, %v1834_v38  ;;  %v512_v41 = vpop.f32.mrb[29].mxu0  ;;  %v640_v42 = vpop.f32.mrb[29].mxu1 }
 0x117   :  { %v1377_v43 = vpack.c.bf16 %v744_v32, %v743_v30  ;;  %v1457_v44 = vpack.c.bf16 %v776_v33, %v775_v31  ;;  %v513_v45 = vadd.f32 %v1834_v38, %v512_v41  ;;  %v641_v46 = vadd.f32 %v1834_v38, %v640_v42  ;;  %v1574_v47 = vpop.f32.mrb[30].mxu0  ;;  %v1606_v48 = vpop.f32.mrb[30].mxu1 }
 0x118   :  { %1486 = vst [vmem:[#allocation2 + $0x68] sm:$0xff] %v1382_v36   ;;  %1502 = vst [vmem:[#allocation2 + $0xe8] sm:$0xff] %v1462_v37   ;;  %v685_v49 = vmax.f32 %v521_v39, 0.0  ;;  %v717_v50 = vmax.f32 %v649_v40, 0.0  ;;  %v524_v51 = vadd.f32 %v1574_v47, %v1834_v38  ;;  %v652_v52 = vadd.f32 %v1606_v48, %v1834_v38  ;;  %v515_v53 = vpop.f32.mrb[31].mxu0  ;;  %v643_v54 = vpop.f32.mrb[31].mxu1 }
 0x119   :  { %1485 = vst [vmem:[#allocation2 + $0x60] sm:$0xff] %v1377_v43   ;;  %1501 = vst [vmem:[#allocation2 + $0xe0] sm:$0xff] %v1457_v44   ;;  %v683_v55 = vmax.f32 %v513_v45, 0.0  ;;  %v715_v56 = vmax.f32 %v641_v46, 0.0  ;;  %v516_v57 = vadd.f32 %v1834_v38, %v515_v53  ;;  %v644_v58 = vadd.f32 %v1834_v38, %v643_v54 }
 0x11a   :  { %v686_v59 = vmax.f32 %v524_v51, 0.0  ;;  %v718_v60 = vmax.f32 %v652_v52, 0.0  ;;  %v749_v63 = vmin.f32 %v685_v49, 6.0  ;;  %v781_v0 = vmin.f32 %v717_v50, 6.0 }
 0x11b   :  { %v684_v61 = vmax.f32 %v516_v57, 0.0  ;;  %v716_v62 = vmax.f32 %v644_v58, 0.0  ;;  %v747_v3 = vmin.f32 %v683_v55, 6.0  ;;  %v779_v4 = vmin.f32 %v715_v56, 6.0 }
 0x11c   :  { %v750_v1 = vmin.f32 %v686_v59, 6.0  ;;  %v782_v2 = vmin.f32 %v718_v60, 6.0 }
 0x11d   :  { %v748_v5 = vmin.f32 %v684_v61, 6.0  ;;  %v780_v6 = vmin.f32 %v716_v62, 6.0 }
 0x11e   :  { %v1392_v7 = vpack.c.bf16 %v750_v1, %v749_v63  ;;  %v1472_v8 = vpack.c.bf16 %v782_v2, %v781_v0 }
 0x11f   :  { %v1387_v9 = vpack.c.bf16 %v748_v5, %v747_v3  ;;  %v1467_v10 = vpack.c.bf16 %v780_v6, %v779_v4 }
 0x120   :  { %1488 = vst [vmem:[#allocation2 + $0x78] sm:$0xff] %v1392_v7   ;;  %1504 = vst [vmem:[#allocation2 + $0xf8] sm:$0xff] %v1472_v8  }
 0x121   :  { %1487 = vst [vmem:[#allocation2 + $0x70] sm:$0xff] %v1387_v9   ;;  %1503 = vst [vmem:[#allocation2 + $0xf0] sm:$0xff] %v1467_v10  }
 0x122   :  { %1660 = shalt.err (!%p1657_p4)
}
 0x123   :  { %s1661_s28 = scalar_lea.hbm %s1915_s3, 4096 }
 0x124   :  { %p1662_p5 = scmp.ne.s32.totalorder %s1915_s3, %s1661_s28  ;;  %p1665_p6 = scmp.lt.u32.totalorder %s1661_s28, %s1915_s3 }
 0x126   :  { %p1667_p7 = pnand %p1665_p6, %p1662_p5 }
 0x128   :  { %1670 = shalt.err (!%p1667_p7)
}
 0x129   :  { %s1675_s6 = smov 64   ;;  %s1676_s7 = smov 4  }
 0x12a   :  { %1114 = dma.vmem_to_hbm [thread:$0]  %s1109_s2, 4096, %s1915_s3, [#allocation3], %s1675_s6, %s1675_s6, %s1676_s7  }
 0x12b   :  { %1671 = dma.done.wait [#allocation3], 4096  }
 0x12c   :  { %1672 = vsyncadd [#allocation3], 4294963200 }
 0x12d   :  { %1118 = vsyncpa [#allocation3], 1 }

</bundles_post_ra>
